<compile_context>
chip_gen: v6e
topology: v6e:2x2x1
jax: 0.10.0
libtpu: 0.0.40
codegen_flags: <defaults>
</compile_context>

<pallas_src>
import functools

import jax
import jax.numpy as jnp
from jax.experimental import pallas as pl
from jax.experimental.pallas import tpu as pltpu


def patch_embed_kernel(x_ref, hog_ref, w_ref, o_ref, xbuf_ref, *, W, pad):
    # x_ref   : (1, Cin,  HW)        one NCHW image, spatial flattened on lanes
    # hog_ref : (1, C_hog, HW)       hog features (channel passthrough)
    # w_ref   : (9, Cout, Cin)       3x3 taps, tap t = kh*3 + kw
    # o_ref   : (1, Cout+C_hog, HW)  conv output with hog fused in
    # xbuf_ref: (Cin, HW + 2*pad)    flat image with zero halo strips
    _, Cin, HW = x_ref.shape
    Cout = w_ref.shape[1]

    # Halo-only init: zero the two pad strips, then one lane-aligned store of
    # the image interior (pad is a multiple of 128).  Safe under any grid
    # partitioning because every iteration rewrites everything it reads.
    strip = jnp.zeros((Cin, pad), dtype=xbuf_ref.dtype)
    xbuf_ref[:, :pad] = strip
    xbuf_ref[:, pad + HW:] = strip
    xbuf_ref[:, pad:pad + HW] = x_ref[0]

    # Column masks for horizontal taps; vertical out-of-range reads land in the
    # zero halo strips of the flat layout.  Built once, outside the tap loop.
    col = jax.lax.broadcasted_iota(jnp.int32, (Cin, HW), 1) % W
    not_last_col = col < (W - 1)     # valid lanes when the tap looks right (kw=2)
    not_first_col = col > 0          # valid lanes when the tap looks left  (kw=0)

    # Nine accumulating MXU dots: (Cout, Cin) @ (Cin, HW), f32 accumulation.
    acc = jnp.zeros((Cout, HW), jnp.float32)
    for t in range(9):
        kh, kw = divmod(t, 3)
        shift = (kh - 1) * W + (kw - 1)
        xs = xbuf_ref[:, pad + shift: pad + shift + HW]
        if kw == 2:
            xs = jnp.where(not_last_col, xs, 0.0)
        elif kw == 0:
            xs = jnp.where(not_first_col, xs, 0.0)
        acc = acc + jnp.dot(w_ref[t], xs, preferred_element_type=jnp.float32)

    # Fused torch.cat((conv, hog), dim=1): two contiguous sublane-range stores.
    o_ref[0, :Cout, :] = acc.astype(o_ref.dtype)
    o_ref[0, Cout:, :] = hog_ref[0].astype(o_ref.dtype)


def overlap_patch_embed(x_nchw, w_oihw, hog_nchw):
    """Forward of OverlapPatchEmbed (PyTorch semantics):
       y = Conv2d(in_c, embed_dim-1, 3, stride=1, padding=1, bias=False)(x)
       return concat([y, inp_hog], dim=1)
    x_nchw   : (B, in_c, H, W)
    w_oihw   : (embed_dim-1, in_c, 3, 3)
    hog_nchw : (B, C_hog, H, W)
    returns  : (B, embed_dim-1 + C_hog, H, W)
    """
    B, Cin, H, W = x_nchw.shape
    Cout = w_oihw.shape[0]
    C_hog = hog_nchw.shape[1]
    Ctot = Cout + C_hog
    HW = H * W
    pad = 128 * pl.cdiv(W + 1, 128)          # halo >= W+1, lane-aligned

    # Contiguous reshapes only (free) - no NCHW<->NHWC transpose passes.
    x_flat = x_nchw.reshape(B, Cin, HW)
    hog_flat = hog_nchw.reshape(B, C_hog, HW)
    # (Cout, Cin, 3, 3) -> (3, 3, Cout, Cin) -> (9, Cout, Cin); tap t = kh*3+kw.
    w_taps = jnp.transpose(w_oihw, (2, 3, 0, 1)).reshape(9, Cout, Cin)

    kernel = functools.partial(patch_embed_kernel, W=W, pad=pad)
    out_flat = pl.pallas_call(
        kernel,
        out_shape=jax.ShapeDtypeStruct((B, Ctot, HW), x_nchw.dtype),
        grid=(B,),
        in_specs=[
            pl.BlockSpec((1, Cin, HW), lambda b: (b, 0, 0)),
            pl.BlockSpec((1, C_hog, HW), lambda b: (b, 0, 0)),
            pl.BlockSpec((9, Cout, Cin), lambda b: (0, 0, 0)),  # resident weights
        ],
        out_specs=pl.BlockSpec((1, Ctot, HW), lambda b: (b, 0, 0)),
        scratch_shapes=[pltpu.VMEM((Cin, HW + 2 * pad), x_nchw.dtype)],
        compiler_params=pltpu.CompilerParams(
            dimension_semantics=("parallel",)),
    )(x_flat, hog_flat, w_taps)

    # TODO(synk): for very large H*W (earliest limit: v7x 64 MiB VMEM / 32 MiB
    # scoped) add a row-tile grid axis with a 1-row halo and set
    # vmem_limit_bytes explicitly; whole-image blocks are fine at these sizes.
    return out_flat.reshape(B, Ctot, H, W)


if __name__ == "__main__":
    key = jax.random.PRNGKey(0)
    kx, kw, kh = jax.random.split(key, 3)

    B, in_c, H, W = 2, 3, 16, 16
    embed_dim = 24
    x = jax.random.normal(kx, (B, in_c, H, W), dtype=jnp.float32)
    # deterministic synthetic conv weights, PyTorch OIHW layout
    w = 0.1 * jax.random.normal(kw, (embed_dim - 1, in_c, 3, 3), dtype=jnp.float32)
    hog = jax.random.normal(kh, (B, 1, H, W), dtype=jnp.float32)

    out = jax.block_until_ready(overlap_patch_embed(x, w, hog))
    assert out.shape == (B, embed_dim, H, W), out.shape

    # sanity check against XLA conv + concat reference (PyTorch semantics)
    y_ref = jax.lax.conv_general_dilated(
        x, w, window_strides=(1, 1), padding=((1, 1), (1, 1)),
        dimension_numbers=("NCHW", "OIHW", "NCHW"))
    ref = jnp.concatenate([y_ref, hog], axis=1)
    assert jnp.allclose(out, ref, atol=1e-4, rtol=1e-4)

    print("KERNEL_OK")
</pallas_src>

<mosaic_0001>
module attributes {stable_mosaic.version = 11 : i64} {
  func.func @patch_embed_kernel(%arg0: i32, %arg1: memref<1x3x256xf32, #tpu.memory_space<vmem>>, %arg2: memref<1x1x256xf32, #tpu.memory_space<vmem>>, %arg3: memref<9x23x3xf32, #tpu.memory_space<vmem>>, %arg4: memref<1x24x256xf32, #tpu.memory_space<vmem>>, %arg5: memref<3x512xf32, #tpu.memory_space<vmem>>) attributes {dimension_semantics = [#tpu.dimension_semantics<parallel>], iteration_bounds = array<i64: 2>, scalar_prefetch = 0 : i64, scratch_operands = 1 : i64, tpu.core_type = #tpu.core_type<tc>, window_params = [{transform_indices = @transform_0, window_bounds = array<i64: 1, 3, 256>}, {transform_indices = @transform_1, window_bounds = array<i64: 1, 1, 256>}, {pipeline_mode = #tpu.pipeline_mode<synchronous>, transform_indices = @transform_2, window_bounds = array<i64: 9, 23, 3>}, {transform_indices = @transform_3, window_bounds = array<i64: 1, 24, 256>}]} {
    %cst = arith.constant 0.000000e+00 : f32
    %0 = vector.broadcast %cst : f32 to vector<3x128xf32>
    %c0 = arith.constant 0 : index
    %c0_0 = arith.constant 0 : index
    %1 = vector.load %arg5[%c0, %c0_0] : memref<3x512xf32, #tpu.memory_space<vmem>>, vector<3x128xf32>
    tpu.vector_store %arg5[%c0, %c0_0], %0 {strides = array<i32>} : memref<3x512xf32, #tpu.memory_space<vmem>>, vector<3x128xf32>,
    %c0_1 = arith.constant 0 : index
    %c384 = arith.constant 384 : index
    %2 = vector.load %arg5[%c0_1, %c384] : memref<3x512xf32, #tpu.memory_space<vmem>>, vector<3x128xf32>
    tpu.vector_store %arg5[%c0_1, %c384], %0 {strides = array<i32>} : memref<3x512xf32, #tpu.memory_space<vmem>>, vector<3x128xf32>,
    %c0_2 = arith.constant 0 : index
    %c0_3 = arith.constant 0 : index
    %c0_4 = arith.constant 0 : index
    %3 = vector.load %arg1[%c0_2, %c0_3, %c0_4] : memref<1x3x256xf32, #tpu.memory_space<vmem>>, vector<1x3x256xf32>
    %4 = vector.shape_cast %3 : vector<1x3x256xf32> to vector<3x256xf32>
    %c0_5 = arith.constant 0 : index
    %c128 = arith.constant 128 : index
    %5 = vector.load %arg5[%c0_5, %c128] : memref<3x512xf32, #tpu.memory_space<vmem>>, vector<3x256xf32>
    tpu.vector_store %arg5[%c0_5, %c128], %4 {strides = array<i32>} : memref<3x512xf32, #tpu.memory_space<vmem>>, vector<3x256xf32>,
    %6 = tpu.iota {dimensions = array<i32: 1>} : vector<3x256xi32>
    %c16_i32 = arith.constant 16 : i32
    %c0_i32 = arith.constant 0 : i32
    %7 = arith.cmpi eq, %c16_i32, %c0_i32 : i32
    %c1_i32 = arith.constant 1 : i32
    %8 = arith.select %7, %c1_i32, %c16_i32 : i32
    %9 = vector.broadcast %8 : i32 to vector<3x256xi32>
    %10 = arith.remsi %6, %9 : vector<3x256xi32>
    %c0_i32_6 = arith.constant 0 : i32
    %11 = vector.broadcast %c0_i32_6 : i32 to vector<3x256xi32>
    %12 = arith.cmpi ne, %10, %11 : vector<3x256xi32>
    %c0_i32_7 = arith.constant 0 : i32
    %13 = vector.broadcast %c0_i32_7 : i32 to vector<3x256xi32>
    %14 = arith.cmpi slt, %10, %13 : vector<3x256xi32>
    %c0_i32_8 = arith.constant 0 : i32
    %15 = arith.cmpi slt, %8, %c0_i32_8 : i32
    %16 = vector.broadcast %15 : i1 to vector<3x256xi1>
    %17 = vector.broadcast %16 : vector<3x256xi1> to vector<3x256xi1>
    %18 = arith.xori %14, %17 : vector<3x256xi1>
    %19 = arith.andi %18, %12 : vector<3x256xi1>
    %20 = vector.broadcast %8 : i32 to vector<3x256xi32>
    %21 = arith.addi %10, %20 : vector<3x256xi32>
    %22 = arith.select %19, %21, %10 : vector<3x256xi1>, vector<3x256xi32>
    %c15_i32 = arith.constant 15 : i32
    %23 = vector.broadcast %c15_i32 : i32 to vector<3x256xi32>
    %24 = arith.cmpi slt, %22, %23 : vector<3x256xi32>
    %c0_i32_9 = arith.constant 0 : i32
    %25 = vector.broadcast %c0_i32_9 : i32 to vector<3x256xi32>
    %26 = arith.cmpi sgt, %22, %25 : vector<3x256xi32>
    %cst_10 = arith.constant 0.000000e+00 : f32
    %27 = vector.broadcast %cst_10 : f32 to vector<23x256xf32>
    %c0_11 = arith.constant 0 : index
    %c111 = arith.constant 111 : index
    %28 = vector.load %arg5[%c0_11, %c111] : memref<3x512xf32, #tpu.memory_space<vmem>>, vector<3x256xf32>
    %cst_12 = arith.constant 0.000000e+00 : f32
    %29 = vector.broadcast %cst_12 : f32 to vector<3x256xf32>
    %30 = arith.select %26, %28, %29 : vector<3x256xi1>, vector<3x256xf32>
    %c0_13 = arith.constant 0 : index
    %c0_14 = arith.constant 0 : index
    %c0_15 = arith.constant 0 : index
    %31 = vector.load %arg3[%c0_13, %c0_14, %c0_15] : memref<9x23x3xf32, #tpu.memory_space<vmem>>, vector<1x23x3xf32>
    %32 = vector.shape_cast %31 : vector<1x23x3xf32> to vector<23x3xf32>
    %cst_16 = arith.constant dense<0.000000e+00> : vector<23x256xf32>
    %33 = tpu.matmul %32, %30, %cst_16 {dimension_numbers = #tpu.dot_dimension_numbers<[1], [0], [0], [1], [0, 0, 1, 1], [], []>} : vector<23x3xf32>, vector<3x256xf32>, vector<23x256xf32> -> vector<23x256xf32>
    %34 = arith.addf %27, %33 : vector<23x256xf32>
    %c0_17 = arith.constant 0 : index
    %c112 = arith.constant 112 : index
    %35 = vector.load %arg5[%c0_17, %c112] : memref<3x512xf32, #tpu.memory_space<vmem>>, vector<3x256xf32>
    %c1 = arith.constant 1 : index
    %c0_18 = arith.constant 0 : index
    %c0_19 = arith.constant 0 : index
    %36 = vector.load %arg3[%c1, %c0_18, %c0_19] : memref<9x23x3xf32, #tpu.memory_space<vmem>>, vector<1x23x3xf32>
    %37 = vector.shape_cast %36 : vector<1x23x3xf32> to vector<23x3xf32>
    %cst_20 = arith.constant dense<0.000000e+00> : vector<23x256xf32>
    %38 = tpu.matmul %37, %35, %cst_20 {dimension_numbers = #tpu.dot_dimension_numbers<[1], [0], [0], [1], [0, 0, 1, 1], [], []>} : vector<23x3xf32>, vector<3x256xf32>, vector<23x256xf32> -> vector<23x256xf32>
    %39 = arith.addf %34, %38 : vector<23x256xf32>
    %c0_21 = arith.constant 0 : index
    %c113 = arith.constant 113 : index
    %40 = vector.load %arg5[%c0_21, %c113] : memref<3x512xf32, #tpu.memory_space<vmem>>, vector<3x256xf32>
    %cst_22 = arith.constant 0.000000e+00 : f32
    %41 = vector.broadcast %cst_22 : f32 to vector<3x256xf32>
    %42 = arith.select %24, %40, %41 : vector<3x256xi1>, vector<3x256xf32>
    %c2 = arith.constant 2 : index
    %c0_23 = arith.constant 0 : index
    %c0_24 = arith.constant 0 : index
    %43 = vector.load %arg3[%c2, %c0_23, %c0_24] : memref<9x23x3xf32, #tpu.memory_space<vmem>>, vector<1x23x3xf32>
    %44 = vector.shape_cast %43 : vector<1x23x3xf32> to vector<23x3xf32>
    %cst_25 = arith.constant dense<0.000000e+00> : vector<23x256xf32>
    %45 = tpu.matmul %44, %42, %cst_25 {dimension_numbers = #tpu.dot_dimension_numbers<[1], [0], [0], [1], [0, 0, 1, 1], [], []>} : vector<23x3xf32>, vector<3x256xf32>, vector<23x256xf32> -> vector<23x256xf32>
    %46 = arith.addf %39, %45 : vector<23x256xf32>
    %c0_26 = arith.constant 0 : index
    %c127 = arith.constant 127 : index
    %47 = vector.load %arg5[%c0_26, %c127] : memref<3x512xf32, #tpu.memory_space<vmem>>, vector<3x256xf32>
    %cst_27 = arith.constant 0.000000e+00 : f32
    %48 = vector.broadcast %cst_27 : f32 to vector<3x256xf32>
    %49 = arith.select %26, %47, %48 : vector<3x256xi1>, vector<3x256xf32>
    %c3 = arith.constant 3 : index
    %c0_28 = arith.constant 0 : index
    %c0_29 = arith.constant 0 : index
    %50 = vector.load %arg3[%c3, %c0_28, %c0_29] : memref<9x23x3xf32, #tpu.memory_space<vmem>>, vector<1x23x3xf32>
    %51 = vector.shape_cast %50 : vector<1x23x3xf32> to vector<23x3xf32>
    %cst_30 = arith.constant dense<0.000000e+00> : vector<23x256xf32>
    %52 = tpu.matmul %51, %49, %cst_30 {dimension_numbers = #tpu.dot_dimension_numbers<[1], [0], [0], [1], [0, 0, 1, 1], [], []>} : vector<23x3xf32>, vector<3x256xf32>, vector<23x256xf32> -> vector<23x256xf32>
    %53 = arith.addf %46, %52 : vector<23x256xf32>
    %c0_31 = arith.constant 0 : index
    %c128_32 = arith.constant 128 : index
    %54 = vector.load %arg5[%c0_31, %c128_32] : memref<3x512xf32, #tpu.memory_space<vmem>>, vector<3x256xf32>
    %c4 = arith.constant 4 : index
    %c0_33 = arith.constant 0 : index
    %c0_34 = arith.constant 0 : index
    %55 = vector.load %arg3[%c4, %c0_33, %c0_34] : memref<9x23x3xf32, #tpu.memory_space<vmem>>, vector<1x23x3xf32>
    %56 = vector.shape_cast %55 : vector<1x23x3xf32> to vector<23x3xf32>
    %cst_35 = arith.constant dense<0.000000e+00> : vector<23x256xf32>
    %57 = tpu.matmul %56, %54, %cst_35 {dimension_numbers = #tpu.dot_dimension_numbers<[1], [0], [0], [1], [0, 0, 1, 1], [], []>} : vector<23x3xf32>, vector<3x256xf32>, vector<23x256xf32> -> vector<23x256xf32>
    %58 = arith.addf %53, %57 : vector<23x256xf32>
    %c0_36 = arith.constant 0 : index
    %c129 = arith.constant 129 : index
    %59 = vector.load %arg5[%c0_36, %c129] : memref<3x512xf32, #tpu.memory_space<vmem>>, vector<3x256xf32>
    %cst_37 = arith.constant 0.000000e+00 : f32
    %60 = vector.broadcast %cst_37 : f32 to vector<3x256xf32>
    %61 = arith.select %24, %59, %60 : vector<3x256xi1>, vector<3x256xf32>
    %c5 = arith.constant 5 : index
    %c0_38 = arith.constant 0 : index
    %c0_39 = arith.constant 0 : index
    %62 = vector.load %arg3[%c5, %c0_38, %c0_39] : memref<9x23x3xf32, #tpu.memory_space<vmem>>, vector<1x23x3xf32>
    %63 = vector.shape_cast %62 : vector<1x23x3xf32> to vector<23x3xf32>
    %cst_40 = arith.constant dense<0.000000e+00> : vector<23x256xf32>
    %64 = tpu.matmul %63, %61, %cst_40 {dimension_numbers = #tpu.dot_dimension_numbers<[1], [0], [0], [1], [0, 0, 1, 1], [], []>} : vector<23x3xf32>, vector<3x256xf32>, vector<23x256xf32> -> vector<23x256xf32>
    %65 = arith.addf %58, %64 : vector<23x256xf32>
    %c0_41 = arith.constant 0 : index
    %c143 = arith.constant 143 : index
    %66 = vector.load %arg5[%c0_41, %c143] : memref<3x512xf32, #tpu.memory_space<vmem>>, vector<3x256xf32>
    %cst_42 = arith.constant 0.000000e+00 : f32
    %67 = vector.broadcast %cst_42 : f32 to vector<3x256xf32>
    %68 = arith.select %26, %66, %67 : vector<3x256xi1>, vector<3x256xf32>
    %c6 = arith.constant 6 : index
    %c0_43 = arith.constant 0 : index
    %c0_44 = arith.constant 0 : index
    %69 = vector.load %arg3[%c6, %c0_43, %c0_44] : memref<9x23x3xf32, #tpu.memory_space<vmem>>, vector<1x23x3xf32>
    %70 = vector.shape_cast %69 : vector<1x23x3xf32> to vector<23x3xf32>
    %cst_45 = arith.constant dense<0.000000e+00> : vector<23x256xf32>
    %71 = tpu.matmul %70, %68, %cst_45 {dimension_numbers = #tpu.dot_dimension_numbers<[1], [0], [0], [1], [0, 0, 1, 1], [], []>} : vector<23x3xf32>, vector<3x256xf32>, vector<23x256xf32> -> vector<23x256xf32>
    %72 = arith.addf %65, %71 : vector<23x256xf32>
    %c0_46 = arith.constant 0 : index
    %c144 = arith.constant 144 : index
    %73 = vector.load %arg5[%c0_46, %c144] : memref<3x512xf32, #tpu.memory_space<vmem>>, vector<3x256xf32>
    %c7 = arith.constant 7 : index
    %c0_47 = arith.constant 0 : index
    %c0_48 = arith.constant 0 : index
    %74 = vector.load %arg3[%c7, %c0_47, %c0_48] : memref<9x23x3xf32, #tpu.memory_space<vmem>>, vector<1x23x3xf32>
    %75 = vector.shape_cast %74 : vector<1x23x3xf32> to vector<23x3xf32>
    %cst_49 = arith.constant dense<0.000000e+00> : vector<23x256xf32>
    %76 = tpu.matmul %75, %73, %cst_49 {dimension_numbers = #tpu.dot_dimension_numbers<[1], [0], [0], [1], [0, 0, 1, 1], [], []>} : vector<23x3xf32>, vector<3x256xf32>, vector<23x256xf32> -> vector<23x256xf32>
    %77 = arith.addf %72, %76 : vector<23x256xf32>
    %c0_50 = arith.constant 0 : index
    %c145 = arith.constant 145 : index
    %78 = vector.load %arg5[%c0_50, %c145] : memref<3x512xf32, #tpu.memory_space<vmem>>, vector<3x256xf32>
    %cst_51 = arith.constant 0.000000e+00 : f32
    %79 = vector.broadcast %cst_51 : f32 to vector<3x256xf32>
    %80 = arith.select %24, %78, %79 : vector<3x256xi1>, vector<3x256xf32>
    %c8 = arith.constant 8 : index
    %c0_52 = arith.constant 0 : index
    %c0_53 = arith.constant 0 : index
    %81 = vector.load %arg3[%c8, %c0_52, %c0_53] : memref<9x23x3xf32, #tpu.memory_space<vmem>>, vector<1x23x3xf32>
    %82 = vector.shape_cast %81 : vector<1x23x3xf32> to vector<23x3xf32>
    %cst_54 = arith.constant dense<0.000000e+00> : vector<23x256xf32>
    %83 = tpu.matmul %82, %80, %cst_54 {dimension_numbers = #tpu.dot_dimension_numbers<[1], [0], [0], [1], [0, 0, 1, 1], [], []>} : vector<23x3xf32>, vector<3x256xf32>, vector<23x256xf32> -> vector<23x256xf32>
    %84 = arith.addf %77, %83 : vector<23x256xf32>
    %c0_55 = arith.constant 0 : index
    %c0_56 = arith.constant 0 : index
    %c0_57 = arith.constant 0 : index
    %85 = vector.load %arg4[%c0_55, %c0_56, %c0_57] : memref<1x24x256xf32, #tpu.memory_space<vmem>>, vector<1x23x256xf32>
    %86 = vector.shape_cast %85 : vector<1x23x256xf32> to vector<23x256xf32>
    %87 = vector.shape_cast %84 : vector<23x256xf32> to vector<1x23x256xf32>
    tpu.vector_store %arg4[%c0_55, %c0_56, %c0_57], %87 {strides = array<i32>} : memref<1x24x256xf32, #tpu.memory_space<vmem>>, vector<1x23x256xf32>,
    %c0_58 = arith.constant 0 : index
    %c0_59 = arith.constant 0 : index
    %c0_60 = arith.constant 0 : index
    %88 = vector.load %arg2[%c0_58, %c0_59, %c0_60] : memref<1x1x256xf32, #tpu.memory_space<vmem>>, vector<1x1x256xf32>
    %89 = vector.shape_cast %88 : vector<1x1x256xf32> to vector<1x256xf32>
    %c0_61 = arith.constant 0 : index
    %c23 = arith.constant 23 : index
    %c0_62 = arith.constant 0 : index
    %90 = vector.load %arg4[%c0_61, %c23, %c0_62] : memref<1x24x256xf32, #tpu.memory_space<vmem>>, vector<1x1x256xf32>
    %91 = vector.shape_cast %90 : vector<1x1x256xf32> to vector<1x256xf32>
    %92 = vector.shape_cast %89 : vector<1x256xf32> to vector<1x1x256xf32>
    tpu.vector_store %arg4[%c0_61, %c23, %c0_62], %92 {strides = array<i32>} : memref<1x24x256xf32, #tpu.memory_space<vmem>>, vector<1x1x256xf32>,
    return
  }
  func.func @transform_0(%arg0: i32) -> (i32, i32, i32) {
    %c0_i32 = arith.constant 0 : i32
    %c0_i32_0 = arith.constant 0 : i32
    %c0_i32_1 = arith.constant 0 : i32
    return %arg0, %c0_i32, %c0_i32_0 : i32, i32, i32
  }
  func.func @transform_1(%arg0: i32) -> (i32, i32, i32) {
    %c0_i32 = arith.constant 0 : i32
    %c0_i32_0 = arith.constant 0 : i32
    %c0_i32_1 = arith.constant 0 : i32
    return %arg0, %c0_i32, %c0_i32_0 : i32, i32, i32
  }
  func.func @transform_2(%arg0: i32) -> (i32, i32, i32) {
    %c0_i32 = arith.constant 0 : i32
    %c0_i32_0 = arith.constant 0 : i32
    %c0_i32_1 = arith.constant 0 : i32
    %c0_i32_2 = arith.constant 0 : i32
    return %c0_i32, %c0_i32_0, %c0_i32_1 : i32, i32, i32
  }
  func.func @transform_3(%arg0: i32) -> (i32, i32, i32) {
    %c0_i32 = arith.constant 0 : i32
    %c0_i32_0 = arith.constant 0 : i32
    %c0_i32_1 = arith.constant 0 : i32
    return %arg0, %c0_i32, %c0_i32_0 : i32, i32, i32
  }
}

</mosaic_0001>

<bundles_post_ra>
// kernel: tpu_custom_call.1
= control target key start
LH: loop header
LB: loop body
LE: loop exit
PB: predicated region body
PF: predicated region fallthrough
CT: control target
= control target key end

     0   :  { %8 = vsyncpa [#allocation4], 0  ;;  %s1973_s0 = inlined_call_operand.vmem [shape: f32[2,3,256], index: 0, kind: input, shape index: {}]   ;;  %s1974_s1 = inlined_call_operand.vmem [shape: f32[2,1,256], index: 1, kind: input, shape index: {}]   ;;  %s1975_s2 = inlined_call_operand.vmem [shape: f32[9,23,3], index: 2, kind: input, shape index: {}]   ;;  %s1976_s3 = inlined_call_operand.hbm [shape: f32[2,24,256], index: 3, kind: output, shape index: {}]  }
   0x1   :  { %10 = vsyncpa [#allocation4 + $0x1], 0  ;;  %s1647_s12 = smov 0   ;;  %s1649_s13 = smov 0  }
   0x2   :  { %s1651_s14 = smov 0   ;;  %s1653_s15 = smov 0  }
   0x3 LB: > { %s1668_s16 = sadd.s32 4294967295, %s1614_s15   ;;  %s1412_s17 = sadd.s32 4294967294, %s1614_s15   ;;  %s1614_s15 = sphi %s1653_s15, %s1990_s15   ;;  %s1610_s14 = sphi %s1651_s14, %s1989_s14   ;;  %s1606_s13 = sphi %s1649_s13, %s1988_s13   ;;  %s1602_s12 = sphi %s1647_s12, %s1987_s12  }
   0x4   : > { %s1672_s18 = sadd.s32 1, %s1614_s15   ;;  %s96_s19 = sadd.s32 1, %s1610_s14 }
   0x5   : > { %s93_s20 = ssub.s32 %s1614_s15, %s1672_s18  ;;  %p106_p0 = scmp.ne.s32.totalorder %s1610_s14, %s1606_s13 }
   0x6   : > { %p94_p1 = scmp.eq.s32.totalorder %s93_s20, 0  ;;  %p107_p2 = scmp.eq.s32.totalorder %s1668_s16, 1 }
   0x7   : > { %p112_p3 = scmp.ne.s32.totalorder %s1606_s13, %s1602_s12  ;;  %p113_p4 = scmp.eq.s32.totalorder %s1412_s17, 1 }
   0x8   : > { %s1683_s21 = scalar_select %p94_p1, %s1610_s14, %s96_s19  }
   0x9   : > { %p1685_p5 = por %p107_p2, %p106_p0  ;;  %p1689_p6 = por %p113_p4, %p112_p3 }
   0xa   : > { %p1415_p7 = scmp.ge.s32.totalorder %s1614_s15, 1  ;;  %p149_p8 = scmp.lt.s32.totalorder %s1614_s15, 3 }
   0xc   : > { %p150_p9 = pnand %p1415_p7, %p149_p8 }
   0xd   : > { %p177_p10 = scmp.lt.s32.totalorder (!%p150_p9), %s1668_s16, 1  ;;  %s174_s6 = sand.u32 (!%p150_p9), 1, %s1606_s13  }
   0xe   : > { %153 = sbr.rel (%p150_p9) target bundleno = 421 (0x1a5), region = 32  ;;  %s1617_s9 = smov (!%p150_p9), 16  }
   0xf   : > { %s1495_s7 = smul.u32 (!%p150_p9), 48, %s174_s6  ;;  %s1618_s10 = smov (!%p150_p9), 17  }
  0x10   : > { %s1619_s11 = smov (!%p150_p9), 15   ;;  %s1620_s17 = smov (!%p150_p9), 1  }
  0x11   : > { %s1710_s8 = scalar_lea.vmem (!%p150_p9), [#allocation3], %s1495_s7  ;;  %s1621_s19 = smov (!%p150_p9), 127  }
  0x12   : > { %s1622_s20 = smov (!%p150_p9), 113   ;;  %s1625_s26 = smov (!%p150_p9), [#allocation3]  }
  0x13   : > { %v1616_v0 = vmov 0.0   ;;  %s178_s24 = scalar_select %p177_p10, %s1668_s16, 1  ;;  %v190_v2 = vlaneseq  ;;  %vm252_vm1 = vcmask 130048   ;;  %vm265_vm2 = vcmask 1042432   ;;  %v1420_v35 = vld [vmem:[%s1975_s2 + $0x20] sm:$0xff]  ;;  %v1419_v36 = vld [vmem:[%s1975_s2 + $0x18] sm:$0xff] }
  0x14   : > { %186 = vst [vmem:[#allocation2] sm:$0x7] %v1616_v0  ;;  %187 = vst [vmem:[#allocation2 + $0xc] sm:$0x7] %v1616_v0  ;;  %340 = vmatprep.mubr.f32.mxu1 %v1616_v0  ;;  %334 = vmatprep.mubr.f32.mxu0 %v1616_v0  ;;  %vm255_vm3 = vcmask 23552   ;;  %vm232_vm4 = vcmask 138240  }
  0x15   : > { %s1492_s25 = sshll.u32 %s178_s24, 3  ;;  %s1418_s29 = sshll.u32 %s178_s24, 1  ;;  %vm1319_vm0 = vcmp.lt.s32.totalorder %v190_v2, 256  ;;  %v191_v25 = vand.u32 127, %v190_v2  ;;  %v1421_v43 = vld [vmem:[%s1975_s2 + $0x28] sm:$0x7f] }
  0x16   : > { %s181_s28 = scalar_lea.vmem %s1973_s0, %s1492_s25  ;;  %s185_s5 = scalar_lea.vmem %s1974_s1, %s1418_s29  ;;  %vm462_vm7 = vcmask 121856   ;;  %v239_v50 = vld [vmem:[%s1975_s2] sm:$0xff]  ;;  %v240_v57 = vld [vmem:[%s1975_s2 + $0x8] sm:$0xff]  ;;  %v1432_v58 = vld [vmem:[%s1975_s2 + $0x30] sm:$0xff]  ;;  %vm588_vm10 = vcmask 7168   ;;  %vm823_vm11 = vcmask 1039360  }
  0x17   : > { %v188_v1 = vld [vmem:[%s181_s28] sm:$0x77]  ;;  %s1623_s24 = smov 112   ;;  %s1624_s25 = smov 111   ;;  %v192_v26 = vadd.s32 128, %v191_v25  ;;  %v197_v29 = vand.u32 15, %v191_v25 }
  0x18   : > { %189 = vst [vmem:[#allocation2 + $0x4] sm:$0x77] %v188_v1  ;;  %v1316_v3 = vld [vmem:[%s185_s5] sm:$0x3]  ;;  %v241_v2 = vld [vmem:[%s1975_s2 + $0x10] sm:$0x7f] }
  0x19   : > { %1488 = vst.msk [vmem:[%s1710_s8 + $0x27] ss:$8 sm:$0x3] %vm1319_vm0, %v1316_v3  ;;  %v204_v30 = vand.u32 15, %v192_v26  ;;  %vm1726_vm5 = vcmp.gt.s32.totalorder %v197_v29, 0  ;;  %vm1760_vm9 = vcmp.lt.s32.totalorder %v197_v29, 15 }
  0x1a   : > { %v1433_v3 = vld [vmem:[%s1975_s2 + $0x38] sm:$0xff]  ;;  %vm949_vm12 = vcmask 924672   ;;  %vm1079_vm13 = vcmask 916480   ;;  %v1450_v29 = vld [vmem:[%s1975_s2 + $0x70] sm:$0x7f]  ;;  %vm1195_vm14 = vcmask 908288  }
  0x1b   : > { %v813_v15 = vld [vmem:[#allocation2 + $0xc] sm:$0x7]  ;;  %vm1730_vm6 = vcmp.gt.s32.totalorder %v204_v30, 0  ;;  %vm1746_vm8 = vcmp.lt.s32.totalorder %v204_v30, 15  ;;  %v1456_v30 = vld [vmem:[%s1975_s2 + $0x78] sm:$0xff]  ;;  %v1473_v46 = vld [vmem:[%s1975_s2 + $0xb0] sm:$0xff] }
  0x1c   : > { %v939_v18 = vld [vmem:[#allocation2 + $0xc] sm:$0x7]  ;;  %s1558_s27 = sshll.u32 %s1625_s26, 4  ;;  %s1559_s27 = int_to_ptr.vmem [resolvable:$false] %s1558_s27 }
  0x1d   : > { %v1065_v21 = vld [vmem:[#allocation2 + $0xc] sm:$0x7]  ;;  %s1560_s28 = scalar_lea.vmem %s1559_s27, 1536 }
  0x1e   : > { %v1185_v24 = vld [vmem:[#allocation2 + $0xc] sm:$0x7] }
  0x1f   : > { %v222_v4 = vld [vmem:[#allocation2 + $0x8] sm:$0x7]  ;;  %v221_v5 = vld [vmem:[#allocation2] sm:$0x77] }
  0x20   : > { %250 = vrot.lane.b32.xlu0 %v222_v4, %s1617_s9  ;;  %246 = vrot.lane.b32.xlu1 %v221_v5, %s1617_s9  ;;  %v225_v6 = vcombine.high %v221_v5, %v221_v5  ;;  %v451_v7 = vld [vmem:[#allocation2] sm:$0x77]  ;;  %v452_v9 = vld [vmem:[#allocation2 + $0x8] sm:$0x7] }
  0x21   : > { %v455_v8 = vcombine.high %v451_v7, %v451_v7  ;;  %v577_v10 = vld [vmem:[#allocation2] sm:$0x77]  ;;  %v578_v12 = vld [vmem:[#allocation2 + $0x8] sm:$0x7] }
  0x22   : > { %v581_v11 = vcombine.high %v577_v10, %v577_v10  ;;  %v812_v13 = vld [vmem:[#allocation2 + $0x4] sm:$0x77] }
  0x23   : > { %v816_v14 = vcombine.high %v812_v13, %v812_v13  ;;  %v938_v16 = vld [vmem:[#allocation2 + $0x4] sm:$0x77] }
  0x24   : > { %226 = vrot.lane.b32.xlu1 %v221_v5, %s1618_s10  ;;  %248 = vrot.lane.b32.xlu0 %v225_v6, %s1617_s9  ;;  %v942_v17 = vcombine.high %v938_v16, %v938_v16  ;;  %v1064_v19 = vld [vmem:[#allocation2 + $0x4] sm:$0x77] }
  0x25   : > { %v1072_v20 = vcombine.high %v1064_v19, %v1064_v19  ;;  %v1184_v22 = vld [vmem:[#allocation2 + $0x4] sm:$0x77] }
  0x26   : > { %v1188_v23 = vcombine.high %v1184_v22, %v1184_v22  ;;  %v703_v53 = vld [vmem:[#allocation2 + $0x4] sm:$0x77] }
  0x27   : > { %v709_v60 = vcombine.high %v703_v53, %v703_v53 }
  0x28   : > { %228 = vrot.lane.b32.xlu1 %v225_v6, %s1618_s10  ;;  %230 = vrot.lane.b32.xlu0 %v222_v4, %s1618_s10 }
  0x2c   : > { %460 = vrot.lane.b32.xlu1 %v452_v9, %s1619_s11  ;;  %458 = vrot.lane.b32.xlu0 %v455_v8, %s1619_s11  ;;  %v1434_v9 = vld [vmem:[%s1975_s2 + $0x40] sm:$0x7f] }
  0x30   : > { %584 = vrot.lane.b32.xlu1 %v581_v11, %s1620_s17  ;;  %456 = vrot.lane.b32.xlu0 %v451_v7, %s1619_s11  ;;  %s1496_s11 = smul.u32 768, %s1668_s16  ;;  %s1932_s16 = scalar_lea.sflag [#allocation4], %s174_s6 }
  0x34   : > { %582 = vrot.lane.b32.xlu1 %v577_v10, %s1620_s17  ;;  %586 = vrot.lane.b32.xlu0 %v578_v12, %s1620_s17  ;;  %v1440_v10 = vld [vmem:[%s1975_s2 + $0x48] sm:$0xff]  ;;  %s1338_s17 = sshll.u32 %s1710_s8, 4  ;;  %s1927_s17 = int_to_ptr.vmem [resolvable:$true] %s1338_s17 }
  0x35   : > { %p1561_p0 = scmp.lt.s32.totalorder %s1927_s17, %s1559_s27 }
  0x38   : > { %821 = vrot.lane.b32.xlu1 %v813_v15, %s1621_s19  ;;  %819 = vrot.lane.b32.xlu0 %v816_v14, %s1621_s19  ;;  %v1441_v15 = vld [vmem:[%s1975_s2 + $0x50] sm:$0xff] }
  0x3c   : > { %945 = vrot.lane.b32.xlu1 %v942_v17, %s1622_s20  ;;  %817 = vrot.lane.b32.xlu0 %v812_v13, %s1621_s19 }
  0x40   : > { %943 = vrot.lane.b32.xlu1 %v938_v16, %s1622_s20  ;;  %947 = vrot.lane.b32.xlu0 %v939_v18, %s1622_s20  ;;  %v1448_v16 = vld [vmem:[%s1975_s2 + $0x60] sm:$0xff] }
  0x44   : > { %1077 = vrot.lane.b32.xlu1 %v1065_v21, %s1623_s24  ;;  %1075 = vrot.lane.b32.xlu0 %v1072_v20, %s1623_s24 }
  0x48   : > { %1191 = vrot.lane.b32.xlu1 %v1188_v23, %s1624_s25  ;;  %1073 = vrot.lane.b32.xlu0 %v1064_v19, %s1623_s24  ;;  %v1449_v23 = vld [vmem:[%s1975_s2 + $0x68] sm:$0xff]  ;;  %s1925_s24 = scalar_lea.hbm %s1976_s3, %s1496_s11 }
  0x4c   : > { %1189 = vrot.lane.b32.xlu1 %v1184_v22, %s1624_s25  ;;  %1193 = vrot.lane.b32.xlu0 %v1185_v24, %s1624_s25  ;;  %v1442_v22 = vld [vmem:[%s1975_s2 + $0x58] sm:$0x7f]  ;;  %s1554_s25 = scalar_lea.vmem %s1927_s17, 768 }
  0x4d   : > { %p1555_p11 = scmp.ne.s32.totalorder %s1927_s17, %s1554_s25  ;;  %p1562_p1 = scmp.lt.s32.totalorder %s1560_s28, %s1554_s25 }
  0x4f   : > { %p1556_p12 = pnand %p1555_p11, %p1685_p5  ;;  %p1563_p2 = por %p1562_p1, %p1561_p0 }
  0x51   : > { %p1557_p13 = pneg %p1556_p12 }
  0x53   : > { %p1564_p3 = pnand %p1563_p2, %p1557_p13 }
  0x92   : > { %v251_v27 = vpop.permute.xlu0 %250  ;;  %v247_v28 = vpop.permute.xlu1 %246 }
  0x96   : > { %v227_v31 = vpop.permute.xlu1 %226  ;;  %v249_v32 = vpop.permute.xlu0 %248 }
  0x97   : > { %v254_v33 = vsel %vm252_vm1, %v249_v32, %v251_v27  ;;  %v253_v34 = vsel %vm252_vm1, %v247_v28, %v249_v32 }
  0x98   : > { %1422 = vmatprep.subr.msk.mxu0 %vm265_vm2, %v254_v33  ;;  %1493 = vmatprep.subr.msk.mxu1 %vm265_vm2, %v254_v33 }
  0x99   : > { %1423 = vmatpush1.msk.msra.mxu0 %vm265_vm2, %v253_v34  ;;  %1494 = vmatpush1.msk.msra.mxu1 %vm265_vm2, %v253_v34  ;;  %v1457_v34 = vld [vmem:[%s1975_s2 + $0x80] sm:$0xff] }
  0x9a   : > { %v229_v39 = vpop.permute.xlu1 %228  ;;  %1425 = vmatmul.mubr.msk.f32.vlgmr.msra.gmra.mxu1 %vm255_vm3, %v1420_v35  ;;  %v231_v40 = vpop.permute.xlu0 %230  ;;  %1424 = vmatmul.mubr.msk.f32.vlgmr.msra.gmra.mxu0 %vm255_vm3, %v1419_v36  ;;  %v1464_v35 = vld [vmem:[%s1975_s2 + $0x90] sm:$0xff] }
  0x9b   : > { %v233_v41 = vsel %vm232_vm4, %v227_v31, %v229_v39  ;;  %v234_v42 = vsel %vm232_vm4, %v229_v39, %v231_v40  ;;  %346 = vmatprep.mubr.f32.mxu1 %v1616_v0  ;;  %552 = vmatprep.mubr.f32.mxu0 %v1616_v0  ;;  %v1458_v40 = vld [vmem:[%s1975_s2 + $0x88] sm:$0x7f] }
  0x9c   : > { %v237_v44 = vsel %vm1726_vm5, %v233_v41, 0.0  ;;  %v238_v45 = vsel %vm1730_vm6, %v234_v42, 0.0  ;;  %v1465_v41 = vld [vmem:[%s1975_s2 + $0x98] sm:$0xff] }
  0x9d   : > { %1427 = vmatprep.subr.msk.mxu1 %vm265_vm2, %v238_v45  ;;  %v1472_v45 = vld [vmem:[%s1975_s2 + $0xa8] sm:$0xff] }
  0x9e   : > { %v461_v47 = vpop.permute.xlu1 %460  ;;  %1426 = vmatmul.mubr.msk.f32.gmra.mxu1 %vm255_vm3, %v1421_v43  ;;  %v459_v48 = vpop.permute.xlu0 %458 }
  0x9f   : > { %1428 = vmatpush1.msk.msra.mxu1 %vm265_vm2, %v237_v44  ;;  %v464_v49 = vsel %vm462_vm7, %v459_v48, %v461_v47  ;;  %432 = vmatprep.mubr.f32.mxu1 %v1616_v0  ;;  %v1466_v44 = vld [vmem:[%s1975_s2 + $0xa0] sm:$0x7f] }
  0xa0   : > { %v468_v51 = vsel %vm1746_vm8, %v464_v49, 0.0  ;;  %v1480_v47 = vld [vmem:[%s1975_s2 + $0xc0] sm:$0xff]  ;;  %v1481_v49 = vld [vmem:[%s1975_s2 + $0xc8] sm:$0xff] }
  0xa1   : > { %1435 = vmatprep.subr.msk.mxu0 %vm265_vm2, %v468_v51 }
  0xa2   : > { %v585_v54 = vpop.permute.xlu1 %584  ;;  %1429 = vmatmul.mubr.msk.f32.vlgmr.msra.gmra.mxu1 %vm255_vm3, %v239_v50  ;;  %v457_v55 = vpop.permute.xlu0 %456  ;;  %v1482_v50 = vld [vmem:[%s1975_s2 + $0xd0] sm:$0x7f] }
  0xa3   : > { %v463_v56 = vsel %vm462_vm7, %v457_v55, %v459_v48  ;;  %438 = vmatprep.mubr.f32.mxu1 %v1616_v0  ;;  %v1474_v48 = vld [vmem:[%s1975_s2 + $0xb8] sm:$0x7f] }
  0xa4   : > { %v467_v59 = vsel %vm1760_vm9, %v463_v56, 0.0 }
  0xa5   : > { %1436 = vmatpush1.msk.msra.mxu0 %vm265_vm2, %v467_v59 }
  0xa6   : > { %v583_v61 = vpop.permute.xlu1 %582  ;;  %1430 = vmatmul.mubr.msk.f32.gmra.mxu1 %vm255_vm3, %v240_v57  ;;  %1437 = vmatmul.mubr.msk.f32.vlgmr.msra.gmra.mxu0 %vm255_vm3, %v1432_v58  ;;  %v587_v62 = vpop.permute.xlu0 %586 }
  0xa7   : > { %v589_v63 = vsel %vm588_vm10, %v583_v61, %v585_v54  ;;  %v590_v1 = vsel %vm588_vm10, %v585_v54, %v587_v62  ;;  %444 = vmatprep.mubr.f32.mxu1 %v1616_v0  ;;  %558 = vmatprep.mubr.f32.mxu0 %v1616_v0 }
  0xa8   : > { %v593_v4 = vsel %vm1726_vm5, %v589_v63, 0.0  ;;  %v594_v5 = vsel %vm1730_vm6, %v590_v1, 0.0  ;;  %1451 = vmatprep.subr.msk.mxu0 %vm265_vm2, %v709_v60 }
  0xa9   : > { %1443 = vmatprep.subr.msk.mxu1 %vm265_vm2, %v594_v5  ;;  %1452 = vmatpush1.msk.msra.mxu0 %vm265_vm2, %v703_v53 }
  0xaa   : > { %v822_v6 = vpop.permute.xlu1 %821  ;;  %1431 = vmatmul.mubr.msk.f32.gmra.mxu1 %vm255_vm3, %v241_v2  ;;  %1438 = vmatmul.mubr.msk.f32.gmra.mxu0 %vm255_vm3, %v1433_v3  ;;  %v820_v7 = vpop.permute.xlu0 %819 }
  0xab   : > { %1444 = vmatpush1.msk.msra.mxu1 %vm265_vm2, %v593_v4  ;;  %v825_v8 = vsel %vm823_vm11, %v820_v7, %v822_v6  ;;  %564 = vmatprep.mubr.f32.mxu0 %v1616_v0 }
  0xac   : > { %v829_v11 = vsel %vm1746_vm8, %v825_v8, 0.0  ;;  %678 = vmatprep.mubr.f32.mxu1 %v1616_v0 }
  0xad   : > { %1459 = vmatprep.subr.msk.mxu1 %vm265_vm2, %v829_v11 }
  0xae   : > { %v946_v12 = vpop.permute.xlu1 %945  ;;  %1439 = vmatmul.mubr.msk.f32.gmra.mxu0 %vm255_vm3, %v1434_v9  ;;  %1445 = vmatmul.mubr.msk.f32.vlgmr.msra.gmra.mxu1 %vm255_vm3, %v1440_v10  ;;  %v818_v13 = vpop.permute.xlu0 %817 }
  0xaf   : > { %v824_v14 = vsel %vm823_vm11, %v818_v13, %v820_v7  ;;  %684 = vmatprep.mubr.f32.mxu1 %v1616_v0  ;;  %787 = vmatprep.mubr.f32.mxu0 %v1616_v0 }
  0xb0   : > { %v828_v17 = vsel %vm1760_vm9, %v824_v14, 0.0 }
  0xb1   : > { %1460 = vmatpush1.msk.msra.mxu1 %vm265_vm2, %v828_v17 }
  0xb2   : > { %v944_v18 = vpop.permute.xlu1 %943  ;;  %1446 = vmatmul.mubr.msk.f32.gmra.mxu1 %vm255_vm3, %v1441_v15  ;;  %1453 = vmatmul.mubr.msk.f32.vlgmr.msra.gmra.mxu0 %vm255_vm3, %v1448_v16  ;;  %v948_v19 = vpop.permute.xlu0 %947 }
  0xb3   : > { %v950_v20 = vsel %vm949_vm12, %v944_v18, %v946_v12  ;;  %v951_v21 = vsel %vm949_vm12, %v946_v12, %v948_v19  ;;  %690 = vmatprep.mubr.f32.mxu1 %v1616_v0  ;;  %793 = vmatprep.mubr.f32.mxu0 %v1616_v0 }
  0xb4   : > { %v954_v24 = vsel %vm1726_vm5, %v950_v20, 0.0  ;;  %v955_v25 = vsel %vm1730_vm6, %v951_v21, 0.0 }
  0xb5   : > { %1467 = vmatprep.subr.msk.mxu0 %vm265_vm2, %v955_v25 }
  0xb6   : > { %v1078_v26 = vpop.permute.xlu1 %1077  ;;  %1447 = vmatmul.mubr.msk.f32.gmra.mxu1 %vm255_vm3, %v1442_v22  ;;  %1454 = vmatmul.mubr.msk.f32.gmra.mxu0 %vm255_vm3, %v1449_v23  ;;  %v1076_v27 = vpop.permute.xlu0 %1075 }
  0xb7   : > { %1468 = vmatpush1.msk.msra.mxu0 %vm265_vm2, %v954_v24  ;;  %v1081_v28 = vsel %vm1079_vm13, %v1076_v27, %v1078_v26  ;;  %799 = vmatprep.mubr.f32.mxu0 %v1616_v0 }
  0xb8   : > { %913 = vmatprep.mubr.f32.mxu1 %v1616_v0  ;;  %1475 = vmatprep.subr.msk.mxu1 %vm265_vm2, %v1081_v28 }
  0xba   : > { %v1192_v31 = vpop.permute.xlu1 %1191  ;;  %1455 = vmatmul.mubr.msk.f32.gmra.mxu0 %vm255_vm3, %v1450_v29  ;;  %1461 = vmatmul.mubr.msk.f32.vlgmr.msra.gmra.mxu1 %vm255_vm3, %v1456_v30  ;;  %v1074_v32 = vpop.permute.xlu0 %1073 }
  0xbb   : > { %v1080_v33 = vsel %vm1079_vm13, %v1074_v32, %v1076_v27  ;;  %919 = vmatprep.mubr.f32.mxu1 %v1616_v0  ;;  %1039 = vmatprep.mubr.f32.mxu0 %v1616_v0 }
  0xbc   : > { %1476 = vmatpush1.msk.msra.mxu1 %vm265_vm2, %v1080_v33 }
  0xbe   : > { %v1190_v36 = vpop.permute.xlu1 %1189  ;;  %1462 = vmatmul.mubr.msk.f32.gmra.mxu1 %vm255_vm3, %v1457_v34  ;;  %1469 = vmatmul.mubr.msk.f32.vlgmr.msra.gmra.mxu0 %vm255_vm3, %v1464_v35  ;;  %v1194_v37 = vpop.permute.xlu0 %1193 }
  0xbf   : > { %v1196_v38 = vsel %vm1195_vm14, %v1190_v36, %v1192_v31  ;;  %v1197_v39 = vsel %vm1195_vm14, %v1192_v31, %v1194_v37  ;;  %925 = vmatprep.mubr.f32.mxu1 %v1616_v0  ;;  %1045 = vmatprep.mubr.f32.mxu0 %v1616_v0 }
  0xc0   : > { %v1200_v42 = vsel %vm1760_vm9, %v1196_v38, 0.0  ;;  %v1201_v43 = vsel %vm1746_vm8, %v1197_v39, 0.0 }
  0xc1   : > { %1483 = vmatprep.subr.msk.mxu0 %vm265_vm2, %v1201_v43 }
  0xc2   : > { %1463 = vmatmul.mubr.msk.f32.gmra.mxu1 %vm255_vm3, %v1458_v40  ;;  %1470 = vmatmul.mubr.msk.f32.gmra.mxu0 %vm255_vm3, %v1465_v41 }
  0xc3   : > { %1484 = vmatpush1.msk.msra.mxu0 %vm265_vm2, %v1200_v42  ;;  %1051 = vmatprep.mubr.f32.mxu0 %v1616_v0 }
  0xc4   : > { %1159 = vmatprep.mubr.f32.mxu1 %v1616_v0 }
  0xc6   : > { %1471 = vmatmul.mubr.msk.f32.gmra.mxu0 %vm255_vm3, %v1466_v44  ;;  %1477 = vmatmul.mubr.msk.f32.vlgmr.msra.gmra.mxu1 %vm255_vm3, %v1472_v45 }
  0xc7   : > { %1165 = vmatprep.mubr.f32.mxu1 %v1616_v0  ;;  %1285 = vmatprep.mubr.f32.mxu0 %v1616_v0 }
  0xca   : > { %1478 = vmatmul.mubr.msk.f32.gmra.mxu1 %vm255_vm3, %v1473_v46  ;;  %1485 = vmatmul.mubr.msk.f32.vlgmr.msra.gmra.mxu0 %vm255_vm3, %v1480_v47 }
  0xcb   : > { %1171 = vmatprep.mubr.f32.mxu1 %v1616_v0  ;;  %1291 = vmatprep.mubr.f32.mxu0 %v1616_v0 }
  0xce   : > { %1479 = vmatmul.mubr.msk.f32.gmra.mxu1 %vm255_vm3, %v1474_v48  ;;  %1486 = vmatmul.mubr.msk.f32.gmra.mxu0 %vm255_vm3, %v1481_v49 }
  0xcf   : > { %1297 = vmatprep.mubr.f32.mxu0 %v1616_v0 }
  0xd2   : > { %1487 = vmatmul.mubr.msk.f32.gmra.mxu0 %vm255_vm3, %v1482_v50 }
 0x15a   : > { %v342_v51 = vpop.f32.mrf.mxu1  ;;  %v336_v55 = vpop.f32.mrf.mxu0 }
 0x15c   : > { %v344_v52 = vpop.f32.mrf.mxu1  ;;  %v338_v57 = vpop.f32.mrf.mxu0 }
 0x15e   : > { %v348_v53 = vpop.f32.mrf.mxu1 }
 0x160   : > { %v350_v54 = vpop.f32.mrf.mxu1 }
 0x162   : > { %v434_v56 = vpop.f32.mrf.mxu1 }
 0x163   : > { %v435_v19 = vadd.f32 %v434_v56, %v336_v55 }
 0x164   : > { %v436_v58 = vpop.f32.mrf.mxu1 }
 0x165   : > { %v437_v22 = vadd.f32 %v436_v58, %v338_v57 }
 0x166   : > { %v440_v59 = vpop.f32.mrf.mxu1  ;;  %v554_v60 = vpop.f32.mrf.mxu0 }
 0x167   : > { %v571_v23 = vadd.f32 %v554_v60, %v435_v19  ;;  %v441_v26 = vadd.f32 %v440_v59, %v342_v51 }
 0x168   : > { %v442_v61 = vpop.f32.mrf.mxu1  ;;  %v556_v62 = vpop.f32.mrf.mxu0 }
 0x169   : > { %v572_v27 = vadd.f32 %v556_v62, %v437_v22  ;;  %v443_v31 = vadd.f32 %v442_v61, %v344_v52 }
 0x16a   : > { %v446_v63 = vpop.f32.mrf.mxu1  ;;  %v560_v0 = vpop.f32.mrf.mxu0 }
 0x16b   : > { %v573_v32 = vadd.f32 %v560_v0, %v441_v26  ;;  %v447_v35 = vadd.f32 %v446_v63, %v348_v53 }
 0x16c   : > { %v448_v1 = vpop.f32.mrf.mxu1  ;;  %v562_v2 = vpop.f32.mrf.mxu0 }
 0x16d   : > { %v574_v38 = vadd.f32 %v562_v2, %v443_v31  ;;  %v449_v42 = vadd.f32 %v448_v1, %v350_v54 }
 0x16e   : > { %v566_v3 = vpop.f32.mrf.mxu0  ;;  %v680_v4 = vpop.f32.mrf.mxu1 }
 0x16f   : > { %v697_v28 = vadd.f32 %v680_v4, %v571_v23  ;;  %v575_v43 = vadd.f32 %v566_v3, %v447_v35 }
 0x170   : > { %v568_v5 = vpop.f32.mrf.mxu0  ;;  %v682_v6 = vpop.f32.mrf.mxu1 }
 0x171   : > { %v698_v33 = vadd.f32 %v682_v6, %v572_v27  ;;  %v576_v50 = vadd.f32 %v568_v5, %v449_v42 }
 0x172   : > { %v686_v7 = vpop.f32.mrf.mxu1  ;;  %v789_v8 = vpop.f32.mrf.mxu0 }
 0x173   : > { %v806_v34 = vadd.f32 %v789_v8, %v697_v28  ;;  %v699_v39 = vadd.f32 %v686_v7, %v573_v32 }
 0x174   : > { %v688_v9 = vpop.f32.mrf.mxu1  ;;  %v791_v10 = vpop.f32.mrf.mxu0 }
 0x175   : > { %v807_v40 = vadd.f32 %v791_v10, %v698_v33  ;;  %v700_v46 = vadd.f32 %v688_v9, %v574_v38 }
 0x176   : > { %v692_v11 = vpop.f32.mrf.mxu1  ;;  %v795_v12 = vpop.f32.mrf.mxu0 }
 0x177   : > { %v808_v47 = vadd.f32 %v795_v12, %v699_v39  ;;  %v701_v51 = vadd.f32 %v692_v11, %v575_v43 }
 0x178   : > { %v694_v13 = vpop.f32.mrf.mxu1  ;;  %v797_v14 = vpop.f32.mrf.mxu0 }
 0x179   : > { %v809_v56 = vadd.f32 %v797_v14, %v700_v46  ;;  %v702_v59 = vadd.f32 %v694_v13, %v576_v50 }
 0x17a   : > { %v801_v15 = vpop.f32.mrf.mxu0  ;;  %v915_v16 = vpop.f32.mrf.mxu1 }
 0x17b   : > { %v932_v41 = vadd.f32 %v915_v16, %v806_v34  ;;  %v810_v60 = vadd.f32 %v801_v15, %v701_v51 }
 0x17c   : > { %v803_v17 = vpop.f32.mrf.mxu0  ;;  %v917_v18 = vpop.f32.mrf.mxu1 }
 0x17d   : > { %v933_v48 = vadd.f32 %v917_v18, %v807_v40  ;;  %v811_v2 = vadd.f32 %v803_v17, %v702_v59 }
 0x17e   : > { %v921_v20 = vpop.f32.mrf.mxu1  ;;  %v1041_v21 = vpop.f32.mrf.mxu0 }
 0x17f   : > { %v1058_v49 = vadd.f32 %v1041_v21, %v932_v41  ;;  %v934_v53 = vadd.f32 %v921_v20, %v808_v47 }
 0x180   : > { %v923_v24 = vpop.f32.mrf.mxu1  ;;  %v1043_v25 = vpop.f32.mrf.mxu0 }
 0x181   : > { %v1059_v57 = vadd.f32 %v1043_v25, %v933_v48  ;;  %v935_v62 = vadd.f32 %v923_v24, %v809_v56 }
 0x182   : > { %v927_v29 = vpop.f32.mrf.mxu1  ;;  %v1047_v30 = vpop.f32.mrf.mxu0 }
 0x183   : > { %v1060_v63 = vadd.f32 %v1047_v30, %v934_v53  ;;  %v936_v5 = vadd.f32 %v927_v29, %v810_v60 }
 0x184   : > { %v929_v36 = vpop.f32.mrf.mxu1  ;;  %v1049_v37 = vpop.f32.mrf.mxu0 }
 0x185   : > { %v1061_v6 = vadd.f32 %v1049_v37, %v935_v62  ;;  %v937_v11 = vadd.f32 %v929_v36, %v811_v2 }
 0x186   : > { %v1053_v44 = vpop.f32.mrf.mxu0  ;;  %v1161_v45 = vpop.f32.mrf.mxu1 }
 0x187   : > { %v1178_v58 = vadd.f32 %v1161_v45, %v1058_v49  ;;  %v1062_v12 = vadd.f32 %v1053_v44, %v936_v5 }
 0x188   : > { %v1055_v52 = vpop.f32.mrf.mxu0  ;;  %v1163_v55 = vpop.f32.mrf.mxu1 }
 0x189   : > { %v1179_v0 = vadd.f32 %v1163_v55, %v1059_v57  ;;  %v1063_v17 = vadd.f32 %v1055_v52, %v937_v11 }
 0x18a   : > { %v1167_v61 = vpop.f32.mrf.mxu1  ;;  %v1287_v54 = vpop.f32.mrf.mxu0 }
 0x18b   : > { %v1304_v1 = vadd.f32 %v1287_v54, %v1178_v58  ;;  %v1180_v7 = vadd.f32 %v1167_v61, %v1060_v63 }
 0x18c   : > { %v1169_v3 = vpop.f32.mrf.mxu1  ;;  %v1289_v4 = vpop.f32.mrf.mxu0 }
 0x18d   : > { %1310 = vst [vmem:[%s1710_s8] sm:$0xff] %v1304_v1  ;;  %v1305_v8 = vadd.f32 %v1289_v4, %v1179_v0  ;;  %v1181_v13 = vadd.f32 %v1169_v3, %v1061_v6 }
 0x18e   : > { %v1173_v9 = vpop.f32.mrf.mxu1  ;;  %v1293_v10 = vpop.f32.mrf.mxu0 }
 0x18f   : > { %1311 = vst [vmem:[%s1710_s8 + $0x8] sm:$0xff] %v1305_v8  ;;  %v1306_v14 = vadd.f32 %v1293_v10, %v1180_v7  ;;  %v1182_v18 = vadd.f32 %v1173_v9, %v1062_v12 }
 0x190   : > { %v1175_v15 = vpop.f32.mrf.mxu1  ;;  %v1295_v16 = vpop.f32.mrf.mxu0 }
 0x191   : > { %1312 = vst [vmem:[%s1710_s8 + $0x10] sm:$0xff] %v1306_v14  ;;  %v1307_v19 = vadd.f32 %v1295_v16, %v1181_v13  ;;  %v1183_v21 = vadd.f32 %v1175_v15, %v1063_v17 }
 0x192   : > { %v1299_v20 = vpop.f32.mrf.mxu0 }
 0x193   : > { %1313 = vst [vmem:[%s1710_s8 + $0x18] sm:$0xff] %v1307_v19  ;;  %v1308_v22 = vadd.f32 %v1299_v20, %v1182_v18 }
 0x194   : > { %v1301_v23 = vpop.f32.mrf.mxu0 }
 0x195   : > { %1314 = vst [vmem:[%s1710_s8 + $0x20] sm:$0x7f] %v1308_v22  ;;  %v1309_v24 = vadd.f32 %v1301_v23, %v1183_v21 }
 0x197   : > { %1315 = vst [vmem:[%s1710_s8 + $0x28] sm:$0x7f] %v1309_v24 }
 0x198   : > { %1567 = shalt.err (!%p1564_p3)
}
 0x199   : > { %s1568_s6 = scalar_lea.hbm %s1925_s24, 768  ;;  %s1572_s30 = scalar_lea.hbm %s1976_s3, 1536 }
 0x19a   : > { %p1569_p4 = scmp.ne.s32.totalorder %s1925_s24, %s1568_s6  ;;  %p1573_p9 = scmp.lt.s32.totalorder %s1925_s24, %s1976_s3 }
 0x19b   : > { %p1574_p10 = scmp.lt.s32.totalorder %s1572_s30, %s1568_s6 }
 0x19c   : > { %p1570_p7 = pnand %p1569_p4, %p1685_p5 }
 0x19d   : > { %p1575_p11 = por %p1574_p10, %p1573_p9 }
 0x19e   : > { %p1571_p8 = pneg %p1570_p7 }
 0x1a0   : > { %p1576_p12 = pnand %p1575_p11, %p1571_p8 }
 0x1a2   : > { %1579 = shalt.err (!%p1576_p12)
}
 0x1a3   : > { %s1626_s7 = smov 256  }
 0x1a4   : > { %1497 = dma.vmem_to_hbm [thread:$0]  (%p1685_p5), %s1927_s17, 768, %s1925_s24, %s1932_s16, %s1626_s7, %s1626_s7, %s1617_s9  }
 0x1a5 PF: > { %p1503_p13 = scmp.ge.s32.totalorder %s1614_s15, 2  ;;  %s1353_s10 = sand.u32 1, %s1602_s12  }
 0x1a6   : > { %s1354_s11 = scalar_lea.sflag [#allocation4], %s1353_s10 }
 0x1a7   : > { %p1500_p0 = pnand %p1503_p13, %p1689_p6 }
 0x1a9   : > { %p1501_p1 = pneg %p1500_p0 }
 0x1ab   : > { %1597 = dma.done.wait (%p1501_p1), %s1354_s11, 768  }
 0x1ac   : > { %1599 = vsyncadd (%p1501_p1), %s1354_s11, 4294966528  ;;  %p13_p2 = scmp.ge.s32.totalorder %s1672_s18, 4   ;;  %s1987_s12 = smov %s1606_s13 }
 0x1ad   : > { %s1988_s13 = smov %s1610_s14  ;;  %s1989_s14 = smov %s1683_s21 }
 0x1ae   : > { %s1990_s15 = smov %s1672_s18  ;;  %15 = sbr.rel (!%p13_p2) target bundleno = 3 (0x3), region = 79 }
 0x1b3   :  { %1359 = vsyncpa [#allocation4], 1 }
 0x1b4   :  { %1361 = vsyncpa [#allocation4 + $0x1], 1 }

</bundles_post_ra>
